<compile_context>
chip_gen: v5e
topology: v5e:2x2
jax: 0.10.0
libtpu: 0.0.40
codegen_flags: <defaults>
</compile_context>

<pallas_src>
import jax
import jax.numpy as jnp
from jax.experimental import pallas as pl
from jax.experimental.pallas import tpu as pltpu


def _round_up(x, m):
    return -(-x // m) * m


def _vmem_budget_bytes():
    try:
        cap = int(pltpu.get_tpu_info().vmem_capacity_bytes)
    except Exception:  # pragma: no cover - interpret mode / older jax
        cap = 64 << 20                     # conservative: v7x per-core VMEM
    return int(cap * 0.70)                 # ~30% headroom for Mosaic internals


def _pick_time_chunk(T, Bp, Hp, budget):
    # resident (non-time-tiled) VMEM: W_hh bf16 x2 bufs, h0/hfin f32 x2, scratch
    fixed = 2 * Hp * Hp * 2 + 5 * Bp * Hp * 4
    # per-time-step, double-buffered: xp (bf16) + out (f32) + mask lane (f32)
    per_t = 2 * (Bp * Hp * 2 + Bp * Hp * 4 + Bp * 4)
    tt_max = max(1, (budget - fixed) // per_t)
    return int(max(1, min(T, tt_max, 128)))


def _rnn_kernel(act_ref, xp_ref, mask_ref, whh_ref, h0_ref,
                out_ref, hfin_ref, h_scratch):
    """Grid = (time_chunks,) ['arbitrary'].

    act_ref : SMEM (Tp,) int32, #rows still active at each global time step
              (non-increasing; used only for whole-chunk skip).
    xp_ref  : VMEM (TT, Bp, Hp) bf16 pre-activations (x@W_ih^T + b_ih + b_hh).
    mask_ref: VMEM (TT, Bp, 1) f32 exact validity mask (1.0 if t < len[b]).
    whh_ref : VMEM (Hp, Hp) bf16 (W_hh transposed).
    h0_ref  : VMEM (Bp, Hp) f32 initial hidden.
    out_ref : VMEM (TT, Bp, Hp) f32 per-step outputs.
    hfin_ref: VMEM (Bp, Hp) f32 final hidden.
    """
    tc = pl.program_id(0)
    n_tc = pl.num_programs(0)
    tt, _, _ = xp_ref.shape

    @pl.when(tc == 0)
    def _():
        h_scratch[...] = h0_ref[...]

    chunk_active = act_ref[tc * tt] > 0    # prefix counts are non-increasing

    @pl.when(chunk_active)
    def _():
        w = whh_ref[...]                   # (Hp, Hp) bf16

        def step(i, h_prev):
            m = mask_ref[i]                # (Bp, 1) f32, precomputed mask
            pre = xp_ref[i].astype(jnp.float32) + jnp.dot(
                h_prev.astype(jnp.bfloat16), w,
                preferred_element_type=jnp.float32)
            h_new = jnp.tanh(pre)          # f32
            out_ref[i] = h_new * m         # zero past sequence end
            return h_prev + m * (h_new - h_prev)   # freeze past sequence end

        unroll = tt if tt <= 32 else 8
        h_scratch[...] = jax.lax.fori_loop(0, tt, step, h_scratch[...],
                                           unroll=unroll)

    @pl.when(jnp.logical_not(chunk_active))
    def _():
        out_ref[...] = jnp.zeros_like(out_ref)

    @pl.when(tc == n_tc - 1)
    def _():
        hfin_ref[...] = h_scratch[...]


@jax.jit
def rnn_forward(x_proj, lens, w_hh_t, h0):
    """x_proj: (T, B, H) bf16/f32 pre-activations; lens: (B,) int32;
    w_hh_t: (H, H) f32 (transposed); h0: (B, H) f32.
    Returns out (T, B, H) f32, h_final (B, H) f32."""
    T, B, H = x_proj.shape

    # lane/sublane-dense padded shapes
    Hp = max(_round_up(H, 128), 128)
    Bp = max(_round_up(B, 8), 8)
    budget = _vmem_budget_bytes()
    TT = _pick_time_chunk(T, Bp, Hp, budget)
    Tp = _round_up(T, TT)

    lens = lens.astype(jnp.int32)
    lens_p = jnp.pad(lens, (0, Bp - B))                     # pad rows: length 0
    t_idx = jnp.arange(Tp, dtype=jnp.int32)

    xp = jnp.pad(x_proj, ((0, Tp - T), (0, Bp - B), (0, Hp - H))
                 ).astype(jnp.bfloat16)                     # bf16 HBM stream
    mask = (t_idx[:, None] < lens_p[None, :]).astype(jnp.float32)[:, :, None]
    act = jnp.sum(lens[None, :] > t_idx[:, None], axis=1).astype(jnp.int32)
    whh = jnp.pad(w_hh_t, ((0, Hp - H), (0, Hp - H))).astype(jnp.bfloat16)
    h0p = jnp.pad(h0, ((0, Bp - B), (0, Hp - H)))

    out, h_fin = pl.pallas_call(
        _rnn_kernel,
        out_shape=(
            jax.ShapeDtypeStruct((Tp, Bp, Hp), jnp.float32),
            jax.ShapeDtypeStruct((Bp, Hp), jnp.float32),
        ),
        grid_spec=pltpu.PrefetchScalarGridSpec(
            num_scalar_prefetch=1,                           # act -> SMEM
            grid=(Tp // TT,),
            in_specs=[
                pl.BlockSpec((TT, Bp, Hp), lambda tc, act: (tc, 0, 0)),  # xp
                pl.BlockSpec((TT, Bp, 1), lambda tc, act: (tc, 0, 0)),   # mask
                pl.BlockSpec((Hp, Hp), lambda tc, act: (0, 0)),          # W_hh^T
                pl.BlockSpec((Bp, Hp), lambda tc, act: (0, 0)),          # h0
            ],
            out_specs=[
                pl.BlockSpec((TT, Bp, Hp), lambda tc, act: (tc, 0, 0)),  # outputs
                pl.BlockSpec((Bp, Hp), lambda tc, act: (0, 0)),          # final h
            ],
            scratch_shapes=[pltpu.VMEM((Bp, Hp), jnp.float32)],
        ),
        compiler_params=pltpu.CompilerParams(
            dimension_semantics=("arbitrary",),
            vmem_limit_bytes=budget),
    )(act, xp, mask, whh, h0p)

    return out[:T, :B, :H], h_fin[:B, :H]


class EncoderPallas:
    """Mirror of the PyTorch Encoder (type='rnn', bidirectional=False)."""

    def __init__(self, input_dim, hidden_dim, vocab_size, key):
        self.hidden_size = hidden_dim
        self.n_layers = 1
        k_emb, k_wih, k_whh, k_bih, k_bhh = jax.random.split(key, 5)
        bound = 1.0 / jnp.sqrt(hidden_dim)
        # nn.Embedding: N(0,1); nn.RNN: U(-1/sqrt(H), 1/sqrt(H))
        self.embedding = jax.random.normal(k_emb, (vocab_size, input_dim),
                                           jnp.float32)
        w_ih = jax.random.uniform(k_wih, (hidden_dim, input_dim),
                                  jnp.float32, -bound, bound)
        w_hh = jax.random.uniform(k_whh, (hidden_dim, hidden_dim),
                                  jnp.float32, -bound, bound)
        b_ih = jax.random.uniform(k_bih, (hidden_dim,), jnp.float32,
                                  -bound, bound)
        b_hh = jax.random.uniform(k_bhh, (hidden_dim,), jnp.float32,
                                  -bound, bound)
        self.w_ih_t = w_ih.T                       # (D, H)
        self.w_hh_t = w_hh.T                       # (H, H)
        self.bias = (b_ih + b_hh)[None, :]         # (1, H)

    def __call__(self, xt, sorted_seq_lens, sorted_indices, ht):
        """xt: (T, B) int32 token ids, columns ordered by descending length.
        sorted_seq_lens: (B,) int32 (max <= T).  sorted_indices: (B,) int32
        original positions.  ht: (1, B, H) f32 in SORTED batch order (same
        convention as the PyTorch module, which feeds ht straight to the packed
        RNN).  Returns (output (T, B, H), hidden (1, B, H)) in original batch
        order."""
        T, B = xt.shape
        # --- glue: embedding gather + hoisted input projection (bf16 MXU path,
        #     f32 accumulate); materialized x_proj stream is bf16.
        x_emb = jnp.take(self.embedding, xt, axis=0)               # (T, B, D)
        x_proj = jnp.dot(x_emb.reshape(T * B, -1).astype(jnp.bfloat16),
                         self.w_ih_t.astype(jnp.bfloat16),
                         preferred_element_type=jnp.float32).reshape(T, B, -1)
        x_proj = (x_proj + self.bias).astype(jnp.bfloat16)         # (T, B, H)
        out, h_fin = rnn_forward(x_proj, sorted_seq_lens.astype(jnp.int32),
                                 self.w_hh_t, ht[0])
        # --- glue: recover original batch ordering
        recover = jnp.argsort(sorted_indices)
        out = jnp.take(out, recover, axis=1)
        hidden = jnp.take(h_fin, recover, axis=0)[None]            # (1, B, H)
        return out, hidden

    def initHidden(self, batch):
        return jnp.zeros((self.n_layers, batch, self.hidden_size), jnp.float32)


def _reference_rnn(x_proj, lens, w_hh_t, h0):
    """Pure-JAX f32 reference of the packed-sequence recurrence."""
    T = x_proj.shape[0]

    def step(h, inp):
        t, x_t = inp
        h_new = jnp.tanh(x_t + h @ w_hh_t)
        valid = (t < lens)[:, None]
        h_upd = jnp.where(valid, h_new, h)
        out_t = jnp.where(valid, h_new, jnp.zeros_like(h_new))
        return h_upd, out_t

    h_fin, out = jax.lax.scan(step, h0, (jnp.arange(T), x_proj))
    return out, h_fin


if __name__ == "__main__":
    key = jax.random.PRNGKey(0)
    k_params, k_tok, k_h = jax.random.split(key, 3)

    T, B, D, H, VOCAB = 8, 4, 16, 32, 20

    enc = EncoderPallas(input_dim=D, hidden_dim=H, vocab_size=VOCAB,
                        key=k_params)

    # token ids (time-major), lengths sorted descending with max == T
    xt = jax.random.randint(k_tok, (T, B), 0, VOCAB, jnp.int32)
    sorted_seq_lens = jnp.array([8, 6, 5, 3], jnp.int32)
    sorted_indices = jnp.array([2, 0, 3, 1], jnp.int32)  # original positions
    ht = jax.random.normal(k_h, (1, B, H), jnp.float32)

    output, hidden = enc(xt, sorted_seq_lens, sorted_indices, ht)
    output = jax.block_until_ready(output)
    hidden = jax.block_until_ready(hidden)

    assert output.shape == (T, B, H)
    assert hidden.shape == (1, B, H)
    assert bool(jnp.all(jnp.isfinite(output))) and bool(jnp.all(jnp.isfinite(hidden)))

    # correctness check against a pure-JAX f32 reference (loose tolerance: the
    # kernel's matmuls and the x_proj stream run in bf16 with f32 accumulate)
    x_emb = jnp.take(enc.embedding, xt, axis=0)
    x_proj = (x_emb.reshape(T * B, -1) @ enc.w_ih_t).reshape(T, B, -1) + enc.bias
    ref_out, ref_hfin = _reference_rnn(x_proj, sorted_seq_lens, enc.w_hh_t, ht[0])
    recover = jnp.argsort(sorted_indices)
    ref_out = jnp.take(ref_out, recover, axis=1)
    ref_hid = jnp.take(ref_hfin, recover, axis=0)[None]
    assert bool(jnp.max(jnp.abs(output - ref_out)) < 0.1)
    assert bool(jnp.max(jnp.abs(hidden - ref_hid)) < 0.1)

    print("KERNEL_OK")
</pallas_src>

<mosaic_0001>
module attributes {stable_mosaic.version = 11 : i64} {
  func.func @_rnn_kernel(%arg0: i32, %arg1: memref<8xi32, #tpu.memory_space<smem>>, %arg2: memref<8x8x128xbf16, #tpu.memory_space<vmem>>, %arg3: memref<8x8x1xf32, #tpu.memory_space<vmem>>, %arg4: memref<128x128xbf16, #tpu.memory_space<vmem>>, %arg5: memref<8x128xf32, #tpu.memory_space<vmem>>, %arg6: memref<8x8x128xf32, #tpu.memory_space<vmem>>, %arg7: memref<8x128xf32, #tpu.memory_space<vmem>>, %arg8: memref<8x128xf32, #tpu.memory_space<vmem>>) attributes {dimension_semantics = [#tpu.dimension_semantics<arbitrary>], iteration_bounds = array<i64: 1>, scalar_prefetch = 1 : i64, scratch_operands = 1 : i64, tpu.core_type = #tpu.core_type<tc>, window_params = [{transform_indices = @transform_0, window_bounds = array<i64: 8, 8, 128>}, {transform_indices = @transform_1, window_bounds = array<i64: 8, 8, 1>}, {pipeline_mode = #tpu.pipeline_mode<synchronous>, transform_indices = @transform_2, window_bounds = array<i64: 128, 128>}, {pipeline_mode = #tpu.pipeline_mode<synchronous>, transform_indices = @transform_3, window_bounds = array<i64: 8, 128>}, {transform_indices = @transform_4, window_bounds = array<i64: 8, 8, 128>}, {pipeline_mode = #tpu.pipeline_mode<synchronous>, transform_indices = @transform_5, window_bounds = array<i64: 8, 128>}]} {
    %c0_i32 = arith.constant 0 : i32
    %0 = arith.cmpi eq, %arg0, %c0_i32 : i32
    %1 = arith.extui %0 : i1 to i32
    %c0_i32_0 = arith.constant 0 : i32
    %2 = arith.cmpi ne, %1, %c0_i32_0 : i32
    scf.if %2 {
      %c0 = arith.constant 0 : index
      %c0_6 = arith.constant 0 : index
      %15 = vector.load %arg5[%c0, %c0_6] : memref<8x128xf32, #tpu.memory_space<vmem>>, vector<8x128xf32>
      %c0_7 = arith.constant 0 : index
      %c0_8 = arith.constant 0 : index
      %16 = vector.load %arg8[%c0_7, %c0_8] : memref<8x128xf32, #tpu.memory_space<vmem>>, vector<8x128xf32>
      tpu.vector_store %arg8[%c0_7, %c0_8], %15 {strides = array<i32>} : memref<8x128xf32, #tpu.memory_space<vmem>>, vector<8x128xf32>,
    } else {
    }
    %c8_i32 = arith.constant 8 : i32
    %3 = arith.muli %arg0, %c8_i32 : i32
    %4 = arith.index_cast %3 : i32 to index
    %5 = memref.load %arg1[%4] : memref<8xi32, #tpu.memory_space<smem>>
    %c0_i32_1 = arith.constant 0 : i32
    %6 = arith.cmpi sgt, %5, %c0_i32_1 : i32
    %7 = arith.extui %6 : i1 to i32
    %c0_i32_2 = arith.constant 0 : i32
    %8 = arith.cmpi ne, %7, %c0_i32_2 : i32
    scf.if %8 {
      %c0 = arith.constant 0 : index
      %c0_6 = arith.constant 0 : index
      %15 = vector.load %arg4[%c0, %c0_6] : memref<128x128xbf16, #tpu.memory_space<vmem>>, vector<128x128xbf16>
      %c0_7 = arith.constant 0 : index
      %c0_8 = arith.constant 0 : index
      %16 = vector.load %arg8[%c0_7, %c0_8] : memref<8x128xf32, #tpu.memory_space<vmem>>, vector<8x128xf32>
      %c0_i32_9 = arith.constant 0 : i32
      %17 = arith.index_cast %c0_i32_9 : i32 to index
      %c0_10 = arith.constant 0 : index
      %c0_11 = arith.constant 0 : index
      %18 = vector.load %arg3[%17, %c0_10, %c0_11] : memref<8x8x1xf32, #tpu.memory_space<vmem>>, vector<1x8x1xf32>
      %19 = vector.shape_cast %18 : vector<1x8x1xf32> to vector<8x1xf32>
      %20 = arith.index_cast %c0_i32_9 : i32 to index
      %c0_12 = arith.constant 0 : index
      %c0_13 = arith.constant 0 : index
      %21 = vector.load %arg2[%20, %c0_12, %c0_13] : memref<8x8x128xbf16, #tpu.memory_space<vmem>>, vector<1x8x128xbf16>
      %22 = vector.shape_cast %21 : vector<1x8x128xbf16> to vector<8x128xbf16>
      %23 = arith.extf %22 : vector<8x128xbf16> to vector<8x128xf32>
      %24 = arith.truncf %16 : vector<8x128xf32> to vector<8x128xbf16>
      %cst = arith.constant dense<0.000000e+00> : vector<8x128xf32>
      %25 = tpu.matmul %24, %15, %cst {dimension_numbers = #tpu.dot_dimension_numbers<[1], [0], [0], [1], [0, 0, 1, 1], [], []>} : vector<8x128xbf16>, vector<128x128xbf16>, vector<8x128xf32> -> vector<8x128xf32>
      %26 = arith.addf %23, %25 : vector<8x128xf32>
      %27 = math.tanh %26 : vector<8x128xf32>
      %28 = vector.broadcast %19 : vector<8x1xf32> to vector<8x128xf32>
      %29 = arith.mulf %27, %28 : vector<8x128xf32>
      %30 = arith.index_cast %c0_i32_9 : i32 to index
      %c0_14 = arith.constant 0 : index
      %c0_15 = arith.constant 0 : index
      %31 = vector.load %arg6[%30, %c0_14, %c0_15] : memref<8x8x128xf32, #tpu.memory_space<vmem>>, vector<1x8x128xf32>
      %32 = vector.shape_cast %31 : vector<1x8x128xf32> to vector<8x128xf32>
      %33 = vector.shape_cast %29 : vector<8x128xf32> to vector<1x8x128xf32>
      tpu.vector_store %arg6[%30, %c0_14, %c0_15], %33 {strides = array<i32>} : memref<8x8x128xf32, #tpu.memory_space<vmem>>, vector<1x8x128xf32>,
      %34 = arith.subf %27, %16 : vector<8x128xf32>
      %35 = vector.broadcast %19 : vector<8x1xf32> to vector<8x128xf32>
      %36 = arith.mulf %35, %34 : vector<8x128xf32>
      %37 = arith.addf %16, %36 : vector<8x128xf32>
      %c1_i32 = arith.constant 1 : i32
      %38 = arith.index_cast %c1_i32 : i32 to index
      %c0_16 = arith.constant 0 : index
      %c0_17 = arith.constant 0 : index
      %39 = vector.load %arg3[%38, %c0_16, %c0_17] : memref<8x8x1xf32, #tpu.memory_space<vmem>>, vector<1x8x1xf32>
      %40 = vector.shape_cast %39 : vector<1x8x1xf32> to vector<8x1xf32>
      %41 = arith.index_cast %c1_i32 : i32 to index
      %c0_18 = arith.constant 0 : index
      %c0_19 = arith.constant 0 : index
      %42 = vector.load %arg2[%41, %c0_18, %c0_19] : memref<8x8x128xbf16, #tpu.memory_space<vmem>>, vector<1x8x128xbf16>
      %43 = vector.shape_cast %42 : vector<1x8x128xbf16> to vector<8x128xbf16>
      %44 = arith.extf %43 : vector<8x128xbf16> to vector<8x128xf32>
      %45 = arith.truncf %37 : vector<8x128xf32> to vector<8x128xbf16>
      %cst_20 = arith.constant dense<0.000000e+00> : vector<8x128xf32>
      %46 = tpu.matmul %45, %15, %cst_20 {dimension_numbers = #tpu.dot_dimension_numbers<[1], [0], [0], [1], [0, 0, 1, 1], [], []>} : vector<8x128xbf16>, vector<128x128xbf16>, vector<8x128xf32> -> vector<8x128xf32>
      %47 = arith.addf %44, %46 : vector<8x128xf32>
      %48 = math.tanh %47 : vector<8x128xf32>
      %49 = vector.broadcast %40 : vector<8x1xf32> to vector<8x128xf32>
      %50 = arith.mulf %48, %49 : vector<8x128xf32>
      %51 = arith.index_cast %c1_i32 : i32 to index
      %c0_21 = arith.constant 0 : index
      %c0_22 = arith.constant 0 : index
      %52 = vector.load %arg6[%51, %c0_21, %c0_22] : memref<8x8x128xf32, #tpu.memory_space<vmem>>, vector<1x8x128xf32>
      %53 = vector.shape_cast %52 : vector<1x8x128xf32> to vector<8x128xf32>
      %54 = vector.shape_cast %50 : vector<8x128xf32> to vector<1x8x128xf32>
      tpu.vector_store %arg6[%51, %c0_21, %c0_22], %54 {strides = array<i32>} : memref<8x8x128xf32, #tpu.memory_space<vmem>>, vector<1x8x128xf32>,
      %55 = arith.subf %48, %37 : vector<8x128xf32>
      %56 = vector.broadcast %40 : vector<8x1xf32> to vector<8x128xf32>
      %57 = arith.mulf %56, %55 : vector<8x128xf32>
      %58 = arith.addf %37, %57 : vector<8x128xf32>
      %c2_i32 = arith.constant 2 : i32
      %59 = arith.index_cast %c2_i32 : i32 to index
      %c0_23 = arith.constant 0 : index
      %c0_24 = arith.constant 0 : index
      %60 = vector.load %arg3[%59, %c0_23, %c0_24] : memref<8x8x1xf32, #tpu.memory_space<vmem>>, vector<1x8x1xf32>
      %61 = vector.shape_cast %60 : vector<1x8x1xf32> to vector<8x1xf32>
      %62 = arith.index_cast %c2_i32 : i32 to index
      %c0_25 = arith.constant 0 : index
      %c0_26 = arith.constant 0 : index
      %63 = vector.load %arg2[%62, %c0_25, %c0_26] : memref<8x8x128xbf16, #tpu.memory_space<vmem>>, vector<1x8x128xbf16>
      %64 = vector.shape_cast %63 : vector<1x8x128xbf16> to vector<8x128xbf16>
      %65 = arith.extf %64 : vector<8x128xbf16> to vector<8x128xf32>
      %66 = arith.truncf %58 : vector<8x128xf32> to vector<8x128xbf16>
      %cst_27 = arith.constant dense<0.000000e+00> : vector<8x128xf32>
      %67 = tpu.matmul %66, %15, %cst_27 {dimension_numbers = #tpu.dot_dimension_numbers<[1], [0], [0], [1], [0, 0, 1, 1], [], []>} : vector<8x128xbf16>, vector<128x128xbf16>, vector<8x128xf32> -> vector<8x128xf32>
      %68 = arith.addf %65, %67 : vector<8x128xf32>
      %69 = math.tanh %68 : vector<8x128xf32>
      %70 = vector.broadcast %61 : vector<8x1xf32> to vector<8x128xf32>
      %71 = arith.mulf %69, %70 : vector<8x128xf32>
      %72 = arith.index_cast %c2_i32 : i32 to index
      %c0_28 = arith.constant 0 : index
      %c0_29 = arith.constant 0 : index
      %73 = vector.load %arg6[%72, %c0_28, %c0_29] : memref<8x8x128xf32, #tpu.memory_space<vmem>>, vector<1x8x128xf32>
      %74 = vector.shape_cast %73 : vector<1x8x128xf32> to vector<8x128xf32>
      %75 = vector.shape_cast %71 : vector<8x128xf32> to vector<1x8x128xf32>
      tpu.vector_store %arg6[%72, %c0_28, %c0_29], %75 {strides = array<i32>} : memref<8x8x128xf32, #tpu.memory_space<vmem>>, vector<1x8x128xf32>,
      %76 = arith.subf %69, %58 : vector<8x128xf32>
      %77 = vector.broadcast %61 : vector<8x1xf32> to vector<8x128xf32>
      %78 = arith.mulf %77, %76 : vector<8x128xf32>
      %79 = arith.addf %58, %78 : vector<8x128xf32>
      %c3_i32 = arith.constant 3 : i32
      %80 = arith.index_cast %c3_i32 : i32 to index
      %c0_30 = arith.constant 0 : index
      %c0_31 = arith.constant 0 : index
      %81 = vector.load %arg3[%80, %c0_30, %c0_31] : memref<8x8x1xf32, #tpu.memory_space<vmem>>, vector<1x8x1xf32>
      %82 = vector.shape_cast %81 : vector<1x8x1xf32> to vector<8x1xf32>
      %83 = arith.index_cast %c3_i32 : i32 to index
      %c0_32 = arith.constant 0 : index
      %c0_33 = arith.constant 0 : index
      %84 = vector.load %arg2[%83, %c0_32, %c0_33] : memref<8x8x128xbf16, #tpu.memory_space<vmem>>, vector<1x8x128xbf16>
      %85 = vector.shape_cast %84 : vector<1x8x128xbf16> to vector<8x128xbf16>
      %86 = arith.extf %85 : vector<8x128xbf16> to vector<8x128xf32>
      %87 = arith.truncf %79 : vector<8x128xf32> to vector<8x128xbf16>
      %cst_34 = arith.constant dense<0.000000e+00> : vector<8x128xf32>
      %88 = tpu.matmul %87, %15, %cst_34 {dimension_numbers = #tpu.dot_dimension_numbers<[1], [0], [0], [1], [0, 0, 1, 1], [], []>} : vector<8x128xbf16>, vector<128x128xbf16>, vector<8x128xf32> -> vector<8x128xf32>
      %89 = arith.addf %86, %88 : vector<8x128xf32>
      %90 = math.tanh %89 : vector<8x128xf32>
      %91 = vector.broadcast %82 : vector<8x1xf32> to vector<8x128xf32>
      %92 = arith.mulf %90, %91 : vector<8x128xf32>
      %93 = arith.index_cast %c3_i32 : i32 to index
      %c0_35 = arith.constant 0 : index
      %c0_36 = arith.constant 0 : index
      %94 = vector.load %arg6[%93, %c0_35, %c0_36] : memref<8x8x128xf32, #tpu.memory_space<vmem>>, vector<1x8x128xf32>
      %95 = vector.shape_cast %94 : vector<1x8x128xf32> to vector<8x128xf32>
      %96 = vector.shape_cast %92 : vector<8x128xf32> to vector<1x8x128xf32>
      tpu.vector_store %arg6[%93, %c0_35, %c0_36], %96 {strides = array<i32>} : memref<8x8x128xf32, #tpu.memory_space<vmem>>, vector<1x8x128xf32>,
      %97 = arith.subf %90, %79 : vector<8x128xf32>
      %98 = vector.broadcast %82 : vector<8x1xf32> to vector<8x128xf32>
      %99 = arith.mulf %98, %97 : vector<8x128xf32>
      %100 = arith.addf %79, %99 : vector<8x128xf32>
      %c4_i32 = arith.constant 4 : i32
      %101 = arith.index_cast %c4_i32 : i32 to index
      %c0_37 = arith.constant 0 : index
      %c0_38 = arith.constant 0 : index
      %102 = vector.load %arg3[%101, %c0_37, %c0_38] : memref<8x8x1xf32, #tpu.memory_space<vmem>>, vector<1x8x1xf32>
      %103 = vector.shape_cast %102 : vector<1x8x1xf32> to vector<8x1xf32>
      %104 = arith.index_cast %c4_i32 : i32 to index
      %c0_39 = arith.constant 0 : index
      %c0_40 = arith.constant 0 : index
      %105 = vector.load %arg2[%104, %c0_39, %c0_40] : memref<8x8x128xbf16, #tpu.memory_space<vmem>>, vector<1x8x128xbf16>
      %106 = vector.shape_cast %105 : vector<1x8x128xbf16> to vector<8x128xbf16>
      %107 = arith.extf %106 : vector<8x128xbf16> to vector<8x128xf32>
      %108 = arith.truncf %100 : vector<8x128xf32> to vector<8x128xbf16>
      %cst_41 = arith.constant dense<0.000000e+00> : vector<8x128xf32>
      %109 = tpu.matmul %108, %15, %cst_41 {dimension_numbers = #tpu.dot_dimension_numbers<[1], [0], [0], [1], [0, 0, 1, 1], [], []>} : vector<8x128xbf16>, vector<128x128xbf16>, vector<8x128xf32> -> vector<8x128xf32>
      %110 = arith.addf %107, %109 : vector<8x128xf32>
      %111 = math.tanh %110 : vector<8x128xf32>
      %112 = vector.broadcast %103 : vector<8x1xf32> to vector<8x128xf32>
      %113 = arith.mulf %111, %112 : vector<8x128xf32>
      %114 = arith.index_cast %c4_i32 : i32 to index
      %c0_42 = arith.constant 0 : index
      %c0_43 = arith.constant 0 : index
      %115 = vector.load %arg6[%114, %c0_42, %c0_43] : memref<8x8x128xf32, #tpu.memory_space<vmem>>, vector<1x8x128xf32>
      %116 = vector.shape_cast %115 : vector<1x8x128xf32> to vector<8x128xf32>
      %117 = vector.shape_cast %113 : vector<8x128xf32> to vector<1x8x128xf32>
      tpu.vector_store %arg6[%114, %c0_42, %c0_43], %117 {strides = array<i32>} : memref<8x8x128xf32, #tpu.memory_space<vmem>>, vector<1x8x128xf32>,
      %118 = arith.subf %111, %100 : vector<8x128xf32>
      %119 = vector.broadcast %103 : vector<8x1xf32> to vector<8x128xf32>
      %120 = arith.mulf %119, %118 : vector<8x128xf32>
      %121 = arith.addf %100, %120 : vector<8x128xf32>
      %c5_i32 = arith.constant 5 : i32
      %122 = arith.index_cast %c5_i32 : i32 to index
      %c0_44 = arith.constant 0 : index
      %c0_45 = arith.constant 0 : index
      %123 = vector.load %arg3[%122, %c0_44, %c0_45] : memref<8x8x1xf32, #tpu.memory_space<vmem>>, vector<1x8x1xf32>
      %124 = vector.shape_cast %123 : vector<1x8x1xf32> to vector<8x1xf32>
      %125 = arith.index_cast %c5_i32 : i32 to index
      %c0_46 = arith.constant 0 : index
      %c0_47 = arith.constant 0 : index
      %126 = vector.load %arg2[%125, %c0_46, %c0_47] : memref<8x8x128xbf16, #tpu.memory_space<vmem>>, vector<1x8x128xbf16>
      %127 = vector.shape_cast %126 : vector<1x8x128xbf16> to vector<8x128xbf16>
      %128 = arith.extf %127 : vector<8x128xbf16> to vector<8x128xf32>
      %129 = arith.truncf %121 : vector<8x128xf32> to vector<8x128xbf16>
      %cst_48 = arith.constant dense<0.000000e+00> : vector<8x128xf32>
      %130 = tpu.matmul %129, %15, %cst_48 {dimension_numbers = #tpu.dot_dimension_numbers<[1], [0], [0], [1], [0, 0, 1, 1], [], []>} : vector<8x128xbf16>, vector<128x128xbf16>, vector<8x128xf32> -> vector<8x128xf32>
      %131 = arith.addf %128, %130 : vector<8x128xf32>
      %132 = math.tanh %131 : vector<8x128xf32>
      %133 = vector.broadcast %124 : vector<8x1xf32> to vector<8x128xf32>
      %134 = arith.mulf %132, %133 : vector<8x128xf32>
      %135 = arith.index_cast %c5_i32 : i32 to index
      %c0_49 = arith.constant 0 : index
      %c0_50 = arith.constant 0 : index
      %136 = vector.load %arg6[%135, %c0_49, %c0_50] : memref<8x8x128xf32, #tpu.memory_space<vmem>>, vector<1x8x128xf32>
      %137 = vector.shape_cast %136 : vector<1x8x128xf32> to vector<8x128xf32>
      %138 = vector.shape_cast %134 : vector<8x128xf32> to vector<1x8x128xf32>
      tpu.vector_store %arg6[%135, %c0_49, %c0_50], %138 {strides = array<i32>} : memref<8x8x128xf32, #tpu.memory_space<vmem>>, vector<1x8x128xf32>,
      %139 = arith.subf %132, %121 : vector<8x128xf32>
      %140 = vector.broadcast %124 : vector<8x1xf32> to vector<8x128xf32>
      %141 = arith.mulf %140, %139 : vector<8x128xf32>
      %142 = arith.addf %121, %141 : vector<8x128xf32>
      %c6_i32 = arith.constant 6 : i32
      %143 = arith.index_cast %c6_i32 : i32 to index
      %c0_51 = arith.constant 0 : index
      %c0_52 = arith.constant 0 : index
      %144 = vector.load %arg3[%143, %c0_51, %c0_52] : memref<8x8x1xf32, #tpu.memory_space<vmem>>, vector<1x8x1xf32>
      %145 = vector.shape_cast %144 : vector<1x8x1xf32> to vector<8x1xf32>
      %146 = arith.index_cast %c6_i32 : i32 to index
      %c0_53 = arith.constant 0 : index
      %c0_54 = arith.constant 0 : index
      %147 = vector.load %arg2[%146, %c0_53, %c0_54] : memref<8x8x128xbf16, #tpu.memory_space<vmem>>, vector<1x8x128xbf16>
      %148 = vector.shape_cast %147 : vector<1x8x128xbf16> to vector<8x128xbf16>
      %149 = arith.extf %148 : vector<8x128xbf16> to vector<8x128xf32>
      %150 = arith.truncf %142 : vector<8x128xf32> to vector<8x128xbf16>
      %cst_55 = arith.constant dense<0.000000e+00> : vector<8x128xf32>
      %151 = tpu.matmul %150, %15, %cst_55 {dimension_numbers = #tpu.dot_dimension_numbers<[1], [0], [0], [1], [0, 0, 1, 1], [], []>} : vector<8x128xbf16>, vector<128x128xbf16>, vector<8x128xf32> -> vector<8x128xf32>
      %152 = arith.addf %149, %151 : vector<8x128xf32>
      %153 = math.tanh %152 : vector<8x128xf32>
      %154 = vector.broadcast %145 : vector<8x1xf32> to vector<8x128xf32>
      %155 = arith.mulf %153, %154 : vector<8x128xf32>
      %156 = arith.index_cast %c6_i32 : i32 to index
      %c0_56 = arith.constant 0 : index
      %c0_57 = arith.constant 0 : index
      %157 = vector.load %arg6[%156, %c0_56, %c0_57] : memref<8x8x128xf32, #tpu.memory_space<vmem>>, vector<1x8x128xf32>
      %158 = vector.shape_cast %157 : vector<1x8x128xf32> to vector<8x128xf32>
      %159 = vector.shape_cast %155 : vector<8x128xf32> to vector<1x8x128xf32>
      tpu.vector_store %arg6[%156, %c0_56, %c0_57], %159 {strides = array<i32>} : memref<8x8x128xf32, #tpu.memory_space<vmem>>, vector<1x8x128xf32>,
      %160 = arith.subf %153, %142 : vector<8x128xf32>
      %161 = vector.broadcast %145 : vector<8x1xf32> to vector<8x128xf32>
      %162 = arith.mulf %161, %160 : vector<8x128xf32>
      %163 = arith.addf %142, %162 : vector<8x128xf32>
      %c7_i32 = arith.constant 7 : i32
      %164 = arith.index_cast %c7_i32 : i32 to index
      %c0_58 = arith.constant 0 : index
      %c0_59 = arith.constant 0 : index
      %165 = vector.load %arg3[%164, %c0_58, %c0_59] : memref<8x8x1xf32, #tpu.memory_space<vmem>>, vector<1x8x1xf32>
      %166 = vector.shape_cast %165 : vector<1x8x1xf32> to vector<8x1xf32>
      %167 = arith.index_cast %c7_i32 : i32 to index
      %c0_60 = arith.constant 0 : index
      %c0_61 = arith.constant 0 : index
      %168 = vector.load %arg2[%167, %c0_60, %c0_61] : memref<8x8x128xbf16, #tpu.memory_space<vmem>>, vector<1x8x128xbf16>
      %169 = vector.shape_cast %168 : vector<1x8x128xbf16> to vector<8x128xbf16>
      %170 = arith.extf %169 : vector<8x128xbf16> to vector<8x128xf32>
      %171 = arith.truncf %163 : vector<8x128xf32> to vector<8x128xbf16>
      %cst_62 = arith.constant dense<0.000000e+00> : vector<8x128xf32>
      %172 = tpu.matmul %171, %15, %cst_62 {dimension_numbers = #tpu.dot_dimension_numbers<[1], [0], [0], [1], [0, 0, 1, 1], [], []>} : vector<8x128xbf16>, vector<128x128xbf16>, vector<8x128xf32> -> vector<8x128xf32>
      %173 = arith.addf %170, %172 : vector<8x128xf32>
      %174 = math.tanh %173 : vector<8x128xf32>
      %175 = vector.broadcast %166 : vector<8x1xf32> to vector<8x128xf32>
      %176 = arith.mulf %174, %175 : vector<8x128xf32>
      %177 = arith.index_cast %c7_i32 : i32 to index
      %c0_63 = arith.constant 0 : index
      %c0_64 = arith.constant 0 : index
      %178 = vector.load %arg6[%177, %c0_63, %c0_64] : memref<8x8x128xf32, #tpu.memory_space<vmem>>, vector<1x8x128xf32>
      %179 = vector.shape_cast %178 : vector<1x8x128xf32> to vector<8x128xf32>
      %180 = vector.shape_cast %176 : vector<8x128xf32> to vector<1x8x128xf32>
      tpu.vector_store %arg6[%177, %c0_63, %c0_64], %180 {strides = array<i32>} : memref<8x8x128xf32, #tpu.memory_space<vmem>>, vector<1x8x128xf32>,
      %181 = arith.subf %174, %163 : vector<8x128xf32>
      %182 = vector.broadcast %166 : vector<8x1xf32> to vector<8x128xf32>
      %183 = arith.mulf %182, %181 : vector<8x128xf32>
      %184 = arith.addf %163, %183 : vector<8x128xf32>
      %c8_i32_65 = arith.constant 8 : i32
      %c0_66 = arith.constant 0 : index
      %c0_67 = arith.constant 0 : index
      %185 = vector.load %arg8[%c0_66, %c0_67] : memref<8x128xf32, #tpu.memory_space<vmem>>, vector<8x128xf32>
      tpu.vector_store %arg8[%c0_66, %c0_67], %184 {strides = array<i32>} : memref<8x128xf32, #tpu.memory_space<vmem>>, vector<8x128xf32>,
    } else {
    }
    %true = arith.constant true
    %9 = arith.xori %6, %true : i1
    %10 = arith.extui %9 : i1 to i32
    %c0_i32_3 = arith.constant 0 : i32
    %11 = arith.cmpi ne, %10, %c0_i32_3 : i32
    scf.if %11 {
      %cst = arith.constant 0.000000e+00 : f32
      %15 = vector.broadcast %cst : f32 to vector<8x8x128xf32>
      %c0 = arith.constant 0 : index
      %c0_6 = arith.constant 0 : index
      %c0_7 = arith.constant 0 : index
      %16 = vector.load %arg6[%c0, %c0_6, %c0_7] : memref<8x8x128xf32, #tpu.memory_space<vmem>>, vector<8x8x128xf32>
      tpu.vector_store %arg6[%c0, %c0_6, %c0_7], %15 {strides = array<i32>} : memref<8x8x128xf32, #tpu.memory_space<vmem>>, vector<8x8x128xf32>,
    } else {
    }
    %c0_i32_4 = arith.constant 0 : i32
    %12 = arith.cmpi eq, %arg0, %c0_i32_4 : i32
    %13 = arith.extui %12 : i1 to i32
    %c0_i32_5 = arith.constant 0 : i32
    %14 = arith.cmpi ne, %13, %c0_i32_5 : i32
    scf.if %14 {
      %c0 = arith.constant 0 : index
      %c0_6 = arith.constant 0 : index
      %15 = vector.load %arg8[%c0, %c0_6] : memref<8x128xf32, #tpu.memory_space<vmem>>, vector<8x128xf32>
      %c0_7 = arith.constant 0 : index
      %c0_8 = arith.constant 0 : index
      %16 = vector.load %arg7[%c0_7, %c0_8] : memref<8x128xf32, #tpu.memory_space<vmem>>, vector<8x128xf32>
      tpu.vector_store %arg7[%c0_7, %c0_8], %15 {strides = array<i32>} : memref<8x128xf32, #tpu.memory_space<vmem>>, vector<8x128xf32>,
    } else {
    }
    return
  }
  func.func @transform_0(%arg0: i32, %arg1: memref<8xi32, #tpu.memory_space<smem>>) -> (i32, i32, i32) {
    %c0_i32 = arith.constant 0 : i32
    %c0_i32_0 = arith.constant 0 : i32
    %c0_i32_1 = arith.constant 0 : i32
    return %arg0, %c0_i32, %c0_i32_0 : i32, i32, i32
  }
  func.func @transform_1(%arg0: i32, %arg1: memref<8xi32, #tpu.memory_space<smem>>) -> (i32, i32, i32) {
    %c0_i32 = arith.constant 0 : i32
    %c0_i32_0 = arith.constant 0 : i32
    %c0_i32_1 = arith.constant 0 : i32
    return %arg0, %c0_i32, %c0_i32_0 : i32, i32, i32
  }
  func.func @transform_2(%arg0: i32, %arg1: memref<8xi32, #tpu.memory_space<smem>>) -> (i32, i32) {
    %c0_i32 = arith.constant 0 : i32
    %c0_i32_0 = arith.constant 0 : i32
    %c0_i32_1 = arith.constant 0 : i32
    return %c0_i32, %c0_i32_0 : i32, i32
  }
  func.func @transform_3(%arg0: i32, %arg1: memref<8xi32, #tpu.memory_space<smem>>) -> (i32, i32) {
    %c0_i32 = arith.constant 0 : i32
    %c0_i32_0 = arith.constant 0 : i32
    %c0_i32_1 = arith.constant 0 : i32
    return %c0_i32, %c0_i32_0 : i32, i32
  }
  func.func @transform_4(%arg0: i32, %arg1: memref<8xi32, #tpu.memory_space<smem>>) -> (i32, i32, i32) {
    %c0_i32 = arith.constant 0 : i32
    %c0_i32_0 = arith.constant 0 : i32
    %c0_i32_1 = arith.constant 0 : i32
    return %arg0, %c0_i32, %c0_i32_0 : i32, i32, i32
  }
  func.func @transform_5(%arg0: i32, %arg1: memref<8xi32, #tpu.memory_space<smem>>) -> (i32, i32) {
    %c0_i32 = arith.constant 0 : i32
    %c0_i32_0 = arith.constant 0 : i32
    %c0_i32_1 = arith.constant 0 : i32
    return %c0_i32, %c0_i32_0 : i32, i32
  }
}

</mosaic_0001>

<bundles_post_ra>
// kernel: rnn_forward.1
= control target key start
LH: loop header
LB: loop body
LE: loop exit
PB: predicated region body
PF: predicated region fallthrough
CT: control target
= control target key end

     0   :  { %s483_s24 = smov [#allocation4]   ;;  %s642_s0 = inlined_call_operand.vmem [shape: s32[8], index: 0, kind: input, shape index: {}]   ;;  %s643_s1 = inlined_call_operand.vmem [shape: bf16[8,8,128], index: 1, kind: input, shape index: {}]   ;;  %s644_s2 = inlined_call_operand.vmem [shape: f32[8,8,1], index: 2, kind: input, shape index: {}]   ;;  %s645_s3 = inlined_call_operand.vmem [shape: bf16[128,128], index: 3, kind: input, shape index: {}]   ;;  %s646_s4 = inlined_call_operand.vmem [shape: f32[8,128], index: 4, kind: input, shape index: {}]   ;;  %s647_s5 = inlined_call_operand.vmem [shape: f32[8,8,128], index: 5, kind: output, shape index: {0}]   ;;  %s648_s6 = inlined_call_operand.vmem [shape: f32[8,128], index: 6, kind: output, shape index: {1}]  }
   0x1   :  { %s13_s23 = sshll.u32 %s642_s0, 4  ;;  %s14_s23 = int_to_ptr.vmem [resolvable:$true] %s13_s23 }
   0x2   :  { %16 = dma.vmem_to_smem %s14_s23, 16, %s483_s24, [#allocation3] }
   0x3   :  { %481 = dma.done.wait [#allocation3], 16 }
   0x4   :  { %482 = vsyncadd [#allocation3], 4294967280 }
   0x5   :  { %19 = sfence }
   0x6   :  { %v32_v0 = vld [vmem:[%s646_s4] sm:$0xff]  ;;  %s527_s27 = sld [smem:[#allocation4]] }
   0x7   :  { %33 = vst [vmem:[#allocation2] sm:$0xff] %v32_v0 }
   0xc   :  { %p384_p0 = scmp.le.s32.totalorder %s527_s27, 0 }
   0xe   :  { %39 = sbr.rel (%p384_p0) target bundleno = 1218 (0x4c2), region = 25 }
  0x13   :  { %v446_v1 = vld [vmem:[%s645_s3 + $0x38] sm:$0xff]  ;;  %v445_v2 = vld [vmem:[%s645_s3 + $0x30] sm:$0xff]  ;;  %v484_v3 = vmov 0   ;;  %v57_v4 = vld [vmem:[%s644_s2] sm:$0xff] }
  0x14   :  { %109 = vmatpush.bf16.msra.mxu0 %v446_v1  ;;  %450 = vset.pattern.permute.xlu0 %v484_v3  ;;  %v444_v5 = vld [vmem:[%s645_s3 + $0x28] sm:$0xff]  ;;  %v443_v7 = vld [vmem:[%s645_s3 + $0x20] sm:$0xff]  ;;  %v442_v8 = vld [vmem:[%s645_s3 + $0x18] sm:$0xff] }
  0x15   :  { %140 = vmatpush.bf16.msra.mxu1 %v446_v1  ;;  %172 = vmatpush.bf16.msra.mxu2 %v446_v1  ;;  %v417_v6 = vld [vmem:[%s644_s2 + $0x8] sm:$0xff]  ;;  %v432_v9 = vld [vmem:[%s644_s2 + $0x30] sm:$0xff]  ;;  %v439_v12 = vld [vmem:[%s645_s3] sm:$0xff] }
  0x16   :  { %126 = vperm.xlu0 %450, %v57_v4   ;;  %451 = vset.pattern.permute.xlu1 %v484_v3  ;;  %v441_v10 = vld [vmem:[%s645_s3 + $0x10] sm:$0xff]  ;;  %v440_v11 = vld [vmem:[%s645_s3 + $0x8] sm:$0xff]  ;;  %v56_v13 = vld [vmem:[#allocation2] sm:$0xff] }
  0x17   :  { %204 = vmatpush.bf16.msra.mxu3 %v446_v1  ;;  %452 = vset.pattern.permute.xlu2 %v484_v3  ;;  %v60_v14 = vpack.c.bf16 %v56_v13, %v56_v13  ;;  %v58_v15 = vld [vmem:[%s643_s1] sm:$0xff]   ;;  %v420_v27 = vld [vmem:[%s644_s2 + $0x10] sm:$0xff]  ;;  %v423_v28 = vld [vmem:[%s644_s2 + $0x18] sm:$0xff] }
  0x18   :  { %110 = vmatpush.bf16.msra.mxu0 %v445_v2  ;;  %v59_v16 = vunpack.c.l.bf16 %v58_v15  ;;  %189 = vperm.xlu1 %451, %v420_v27   ;;  %v138_v29 = vunpack.c.h.bf16 %v58_v15  ;;  %v435_v31 = vld [vmem:[%s644_s2 + $0x38] sm:$0xff]  ;;  %v421_v41 = vld [vmem:[%s643_s1 + $0x8] sm:$0xff]   ;;  %v426_v53 = vld [vmem:[%s644_s2 + $0x20] sm:$0xff] }
  0x19   :  { %141 = vmatpush.bf16.msra.mxu1 %v445_v2  ;;  %173 = vmatpush.bf16.msra.mxu2 %v445_v2  ;;  %v170_v42 = vunpack.c.l.bf16 %v421_v41  ;;  %v429_v54 = vld [vmem:[%s644_s2 + $0x28] sm:$0xff]  ;;  %v202_v55 = vunpack.c.h.bf16 %v421_v41 }
  0x1a   :  { %253 = vperm.xlu2 %452, %v426_v53  }
  0x1b   :  { %205 = vmatpush.bf16.msra.mxu3 %v445_v2 }
  0x1c   :  { %111 = vmatpush.bf16.msra.mxu0 %v444_v5 }
  0x1d   :  { %142 = vmatpush.bf16.msra.mxu1 %v444_v5  ;;  %174 = vmatpush.bf16.msra.mxu2 %v444_v5 }
  0x1e   :  { %157 = vperm.xlu0 %450, %v417_v6  }
  0x1f   :  { %206 = vmatpush.bf16.msra.mxu3 %v444_v5 }
  0x20   :  { %112 = vmatpush.bf16.msra.mxu0 %v443_v7  ;;  %221 = vperm.xlu1 %451, %v423_v28  }
  0x21   :  { %143 = vmatpush.bf16.msra.mxu1 %v443_v7  ;;  %175 = vmatpush.bf16.msra.mxu2 %v443_v7 }
  0x22   :  { %285 = vperm.xlu2 %452, %v429_v54  }
  0x23   :  { %207 = vmatpush.bf16.msra.mxu3 %v443_v7 }
  0x24   :  { %113 = vmatpush.bf16.msra.mxu0 %v442_v8 }
  0x25   :  { %144 = vmatpush.bf16.msra.mxu1 %v442_v8  ;;  %176 = vmatpush.bf16.msra.mxu2 %v442_v8 }
  0x26   :  { %317 = vperm.xlu0 %450, %v432_v9  }
  0x27   :  { %208 = vmatpush.bf16.msra.mxu3 %v442_v8 }
  0x28   :  { %114 = vmatpush.bf16.msra.mxu0 %v441_v10  ;;  %349 = vperm.xlu1 %451, %v435_v31  }
  0x29   :  { %145 = vmatpush.bf16.msra.mxu1 %v441_v10  ;;  %177 = vmatpush.bf16.msra.mxu2 %v441_v10 }
  0x2b   :  { %209 = vmatpush.bf16.msra.mxu3 %v441_v10 }
  0x2c   :  { %115 = vmatpush.bf16.msra.mxu0 %v440_v11 }
  0x2d   :  { %146 = vmatpush.bf16.msra.mxu1 %v440_v11  ;;  %178 = vmatpush.bf16.msra.mxu2 %v440_v11 }
  0x2f   :  { %210 = vmatpush.bf16.msra.mxu3 %v440_v11 }
  0x30   :  { %116 = vmatpush.bf16.msra.mxu0 %v439_v12 }
  0x31   :  { %147 = vmatpush.bf16.msra.mxu1 %v439_v12  ;;  %179 = vmatpush.bf16.msra.mxu2 %v439_v12 }
  0x33   :  { %117 = vmatmul.bf16.vlgmr.msra.gmra.mxu0 %v60_v14  ;;  %211 = vmatpush.bf16.msra.mxu3 %v439_v12 }
  0x34   :  { %236 = vmatpush.bf16.msrb.mxu0 %v446_v1 }
  0x35   :  { %268 = vmatpush.bf16.msrb.mxu1 %v446_v1  ;;  %300 = vmatpush.bf16.msrb.mxu2 %v446_v1 }
  0x37   :  { %332 = vmatpush.bf16.msrb.mxu3 %v446_v1 }
  0x38   :  { %237 = vmatpush.bf16.msrb.mxu0 %v445_v2 }
  0x39   :  { %269 = vmatpush.bf16.msrb.mxu1 %v445_v2  ;;  %301 = vmatpush.bf16.msrb.mxu2 %v445_v2 }
  0x3b   :  { %333 = vmatpush.bf16.msrb.mxu3 %v445_v2  ;;  %v427_v2 = vld [vmem:[%s643_s1 + $0x10] sm:$0xff]  }
  0x3c   :  { %238 = vmatpush.bf16.msrb.mxu0 %v444_v5  ;;  %v234_v3 = vunpack.c.l.bf16 %v427_v2  ;;  %v266_v14 = vunpack.c.h.bf16 %v427_v2 }
  0x3d   :  { %270 = vmatpush.bf16.msrb.mxu1 %v444_v5  ;;  %302 = vmatpush.bf16.msrb.mxu2 %v444_v5 }
  0x3f   :  { %334 = vmatpush.bf16.msrb.mxu3 %v444_v5 }
  0x40   :  { %239 = vmatpush.bf16.msrb.mxu0 %v443_v7 }
  0x41   :  { %271 = vmatpush.bf16.msrb.mxu1 %v443_v7  ;;  %303 = vmatpush.bf16.msrb.mxu2 %v443_v7 }
  0x43   :  { %335 = vmatpush.bf16.msrb.mxu3 %v443_v7 }
  0x44   :  { %240 = vmatpush.bf16.msrb.mxu0 %v442_v8 }
  0x45   :  { %272 = vmatpush.bf16.msrb.mxu1 %v442_v8  ;;  %304 = vmatpush.bf16.msrb.mxu2 %v442_v8 }
  0x47   :  { %336 = vmatpush.bf16.msrb.mxu3 %v442_v8 }
  0x48   :  { %241 = vmatpush.bf16.msrb.mxu0 %v441_v10 }
  0x49   :  { %273 = vmatpush.bf16.msrb.mxu1 %v441_v10  ;;  %305 = vmatpush.bf16.msrb.mxu2 %v441_v10 }
  0x4b   :  { %337 = vmatpush.bf16.msrb.mxu3 %v441_v10 }
  0x4c   :  { %242 = vmatpush.bf16.msrb.mxu0 %v440_v11 }
  0x4d   :  { %274 = vmatpush.bf16.msrb.mxu1 %v440_v11  ;;  %306 = vmatpush.bf16.msrb.mxu2 %v440_v11 }
  0x4f   :  { %338 = vmatpush.bf16.msrb.mxu3 %v440_v11 }
  0x50   :  { %243 = vmatpush.bf16.msrb.mxu0 %v439_v12 }
  0x51   :  { %275 = vmatpush.bf16.msrb.mxu1 %v439_v12  ;;  %307 = vmatpush.bf16.msrb.mxu2 %v439_v12 }
  0x53   :  { %339 = vmatpush.bf16.msrb.mxu3 %v439_v12 }
  0x74   :  { %v254_v8 = vpop.permute.xlu2 %253 }
  0x88   :  { %v127_v21 = vpop.permute.xlu0 %126 }
  0x8a   :  { %v190_v47 = vpop.permute.xlu1 %189 }
  0x90   :  { %v158_v35 = vpop.permute.xlu0 %157 }
  0x92   :  { %v222_v60 = vpop.permute.xlu1 %221 }
  0x98   :  { %v318_v31 = vpop.permute.xlu0 %317 }
  0xb0   :  { %v118_v17 = vpop.f32.mrf.mxu0 }
  0xb1   :  { %v122_v18 = vadd.f32 %v118_v17, %v59_v16 }
  0xb3   :  { %453 = vtanh.f32 %v122_v18 }
  0xb8   :  { %v120_v19 = vpop.f32.mrf.mxu0 }
  0xb9   :  { %v454_v20 = vpop.eup %453  ;;  %v286_v19 = vpop.permute.xlu2 %285 }
  0xba   :  { %v129_v22 = vmul.f32 %v454_v20, %v127_v21  ;;  %v131_v23 = vsub.f32 %v454_v20, %v56_v13 }
  0xbc   :  { %130 = vst [vmem:[%s647_s5] sm:$0xff] %v129_v22  ;;  %v132_v24 = vmul.f32 %v131_v23, %v127_v21 }
  0xbe   :  { %v133_v25 = vadd.f32 %v132_v24, %v56_v13 }
  0xc0   :  { %v139_v26 = vpack.c.bf16 %v133_v25, %v133_v25 }
  0xc2   :  { %148 = vmatmul.bf16.vlgmr.msra.gmra.mxu1 %v139_v26 }
 0x13f   :  { %v149_v30 = vpop.f32.mrf.mxu1 }
 0x140   :  { %v153_v32 = vadd.f32 %v149_v30, %v138_v29 }
 0x142   :  { %455 = vtanh.f32 %v153_v32 }
 0x147   :  { %v151_v33 = vpop.f32.mrf.mxu1 }
 0x148   :  { %v456_v34 = vpop.eup %455 }
 0x149   :  { %v160_v36 = vmul.f32 %v456_v34, %v158_v35  ;;  %v163_v37 = vsub.f32 %v456_v34, %v133_v25 }
 0x14b   :  { %419 = vst [vmem:[%s647_s5 + $0x8] sm:$0xff] %v160_v36  ;;  %v164_v38 = vmul.f32 %v163_v37, %v158_v35 }
 0x14d   :  { %v165_v39 = vadd.f32 %v164_v38, %v133_v25  ;;  %v433_v25 = vld [vmem:[%s643_s1 + $0x18] sm:$0xff]  }
 0x14e   :  { %v298_v26 = vunpack.c.l.bf16 %v433_v25  ;;  %v330_v37 = vunpack.c.h.bf16 %v433_v25 }
 0x14f   :  { %v171_v40 = vpack.c.bf16 %v165_v39, %v165_v39 }
 0x151   :  { %180 = vmatmul.bf16.vlgmr.msra.gmra.mxu2 %v171_v40 }
 0x1d4   :  { %v181_v43 = vpop.f32.mrf.mxu2 }
 0x1d5   :  { %v185_v44 = vadd.f32 %v181_v43, %v170_v42  ;;  %v350_v42 = vpop.permute.xlu1 %349 }
 0x1d7   :  { %457 = vtanh.f32 %v185_v44 }
 0x1dc   :  { %v183_v45 = vpop.f32.mrf.mxu2 }
 0x1dd   :  { %v458_v46 = vpop.eup %457 }
 0x1de   :  { %v192_v48 = vmul.f32 %v458_v46, %v190_v47  ;;  %v195_v49 = vsub.f32 %v458_v46, %v165_v39 }
 0x1e0   :  { %422 = vst [vmem:[%s647_s5 + $0x10] sm:$0xff] %v192_v48  ;;  %v196_v50 = vmul.f32 %v195_v49, %v190_v47 }
 0x1e2   :  { %v197_v51 = vadd.f32 %v196_v50, %v165_v39 }
 0x1e4   :  { %v203_v52 = vpack.c.bf16 %v197_v51, %v197_v51 }
 0x1e6   :  { %212 = vmatmul.bf16.vlgmr.msra.gmra.mxu3 %v203_v52 }
 0x269   :  { %v213_v56 = vpop.f32.mrf.mxu3 }
 0x26a   :  { %v217_v57 = vadd.f32 %v213_v56, %v202_v55 }
 0x26c   :  { %459 = vtanh.f32 %v217_v57 }
 0x271   :  { %v215_v58 = vpop.f32.mrf.mxu3 }
 0x272   :  { %v460_v59 = vpop.eup %459 }
 0x273   :  { %v224_v61 = vmul.f32 %v460_v59, %v222_v60  ;;  %v227_v62 = vsub.f32 %v460_v59, %v197_v51 }
 0x275   :  { %425 = vst [vmem:[%s647_s5 + $0x18] sm:$0xff] %v224_v61  ;;  %v228_v63 = vmul.f32 %v227_v62, %v222_v60 }
 0x277   :  { %v229_v0 = vadd.f32 %v228_v63, %v197_v51 }
 0x279   :  { %v235_v1 = vpack.c.bf16 %v229_v0, %v229_v0 }
 0x27b   :  { %244 = vmatmul.bf16.vlgmr.msrb.gmra.mxu0 %v235_v1 }
 0x2f8   :  { %v245_v4 = vpop.f32.mrf.mxu0 }
 0x2f9   :  { %v249_v5 = vadd.f32 %v245_v4, %v234_v3 }
 0x2fb   :  { %461 = vtanh.f32 %v249_v5 }
 0x300   :  { %v247_v6 = vpop.f32.mrf.mxu0 }
 0x301   :  { %v462_v7 = vpop.eup %461 }
 0x302   :  { %v256_v9 = vmul.f32 %v462_v7, %v254_v8  ;;  %v259_v10 = vsub.f32 %v462_v7, %v229_v0 }
 0x304   :  { %428 = vst [vmem:[%s647_s5 + $0x20] sm:$0xff] %v256_v9  ;;  %v260_v11 = vmul.f32 %v259_v10, %v254_v8 }
 0x306   :  { %v261_v12 = vadd.f32 %v260_v11, %v229_v0 }
 0x308   :  { %v267_v13 = vpack.c.bf16 %v261_v12, %v261_v12 }
 0x30a   :  { %276 = vmatmul.bf16.vlgmr.msrb.gmra.mxu1 %v267_v13 }
 0x387   :  { %v277_v15 = vpop.f32.mrf.mxu1 }
 0x388   :  { %v281_v16 = vadd.f32 %v277_v15, %v266_v14 }
 0x38a   :  { %463 = vtanh.f32 %v281_v16 }
 0x38f   :  { %v279_v17 = vpop.f32.mrf.mxu1 }
 0x390   :  { %v464_v18 = vpop.eup %463 }
 0x391   :  { %v288_v20 = vmul.f32 %v464_v18, %v286_v19  ;;  %v291_v21 = vsub.f32 %v464_v18, %v261_v12 }
 0x393   :  { %431 = vst [vmem:[%s647_s5 + $0x28] sm:$0xff] %v288_v20  ;;  %v292_v22 = vmul.f32 %v291_v21, %v286_v19 }
 0x395   :  { %v293_v23 = vadd.f32 %v292_v22, %v261_v12 }
 0x397   :  { %v299_v24 = vpack.c.bf16 %v293_v23, %v293_v23 }
 0x399   :  { %308 = vmatmul.bf16.vlgmr.msrb.gmra.mxu2 %v299_v24 }
 0x41c   :  { %v309_v27 = vpop.f32.mrf.mxu2 }
 0x41d   :  { %v313_v28 = vadd.f32 %v309_v27, %v298_v26 }
 0x41f   :  { %465 = vtanh.f32 %v313_v28 }
 0x424   :  { %v311_v29 = vpop.f32.mrf.mxu2 }
 0x425   :  { %v466_v30 = vpop.eup %465 }
 0x426   :  { %v320_v32 = vmul.f32 %v466_v30, %v318_v31  ;;  %v323_v33 = vsub.f32 %v466_v30, %v293_v23 }
 0x428   :  { %434 = vst [vmem:[%s647_s5 + $0x30] sm:$0xff] %v320_v32  ;;  %v324_v34 = vmul.f32 %v323_v33, %v318_v31 }
 0x42a   :  { %v325_v35 = vadd.f32 %v324_v34, %v293_v23 }
 0x42c   :  { %v331_v36 = vpack.c.bf16 %v325_v35, %v325_v35 }
 0x42e   :  { %340 = vmatmul.bf16.vlgmr.msrb.gmra.mxu3 %v331_v36 }
 0x4b1   :  { %v341_v38 = vpop.f32.mrf.mxu3 }
 0x4b2   :  { %v345_v39 = vadd.f32 %v341_v38, %v330_v37 }
 0x4b4   :  { %467 = vtanh.f32 %v345_v39 }
 0x4b9   :  { %v343_v40 = vpop.f32.mrf.mxu3 }
 0x4ba   :  { %v468_v41 = vpop.eup %467 }
 0x4bb   :  { %v352_v43 = vmul.f32 %v468_v41, %v350_v42  ;;  %v355_v44 = vsub.f32 %v468_v41, %v325_v35 }
 0x4bd   :  { %437 = vst [vmem:[%s647_s5 + $0x38] sm:$0xff] %v352_v43  ;;  %v356_v45 = vmul.f32 %v355_v44, %v350_v42 }
 0x4bf   :  { %v357_v46 = vadd.f32 %v356_v45, %v325_v35 }
 0x4c1   :  { %358 = vst [vmem:[#allocation2] sm:$0xff] %v357_v46 }
 0x4c2 PF:  { %p438_p1 = scmp.gt.s32.totalorder %s527_s27, 0 }
 0x4c4   :  { %362 = sbr.rel (%p438_p1) target bundleno = 1234 (0x4d2), region = 29 }
 0x4c9   :  { %v485_v47 = vmov 0.0  }
 0x4ca   :  { %363 = vst [vmem:[%s647_s5] sm:$0xff] %v485_v47 }
 0x4cb   :  { %364 = vst [vmem:[%s647_s5 + $0x8] sm:$0xff] %v485_v47 }
 0x4cc   :  { %365 = vst [vmem:[%s647_s5 + $0x10] sm:$0xff] %v485_v47 }
 0x4cd   :  { %366 = vst [vmem:[%s647_s5 + $0x18] sm:$0xff] %v485_v47 }
 0x4ce   :  { %367 = vst [vmem:[%s647_s5 + $0x20] sm:$0xff] %v485_v47 }
 0x4cf   :  { %368 = vst [vmem:[%s647_s5 + $0x28] sm:$0xff] %v485_v47 }
 0x4d0   :  { %369 = vst [vmem:[%s647_s5 + $0x30] sm:$0xff] %v485_v47 }
 0x4d1   :  { %370 = vst [vmem:[%s647_s5 + $0x38] sm:$0xff] %v485_v47 }
 0x4d2 PF:  { %v374_v48 = vld [vmem:[#allocation2] sm:$0xff] }
 0x4d3   :  { %375 = vst [vmem:[%s648_s6] sm:$0xff] %v374_v48 }

</bundles_post_ra>
